<compile_context>
chip_gen: v7x
topology: tpu7x:2x2x1
jax: 0.10.0
libtpu: 0.0.40
codegen_flags: <defaults>
</compile_context>

<pallas_src>
import jax
import jax.numpy as jnp
from jax.experimental import pallas as pl
from jax.experimental.pallas import tpu as pltpu

STATE_DIM = 8
ACTION_DIM = 2
HIDDEN = (400, 300)          # logical hidden sizes (PyTorch CriticNet)
IN_PAD = 16                  # cat([state, action]) = 10 -> padded to 16
H1_PAD, H2_PAD = 512, 384    # lane-padded hidden sizes (multiples of 128)
TB_CAP = 2048                # max batch-tile rows


def _round_up(n, m):
    return ((n + m - 1) // m) * m


def critic_kernel(xa_ref, w1_ref, b1_ref, w2_ref, b2_ref, w3_ref, b3_ref,
                  out_ref):
    # layer 1: single MXU dot (bf16 operands, f32 accumulate), fused bias+ReLU+cast
    xa = xa_ref[...].astype(jnp.bfloat16)                                # (TB, 16)
    h1 = jnp.dot(xa, w1_ref[...], preferred_element_type=jnp.float32)    # (TB, 512)
    h1 = jnp.maximum(h1 + b1_ref[...], 0.0).astype(jnp.bfloat16)         # (TB, 512) bf16

    # layer 2 + ReLU
    h2 = jnp.dot(h1, w2_ref[...], preferred_element_type=jnp.float32)    # (TB, 384)
    h2 = jnp.maximum(h2 + b2_ref[...], 0.0)                              # f32

    # layer 3 (single Q column): VPU multiply + lane reduction, no MXU.
    q = jnp.sum(h2 * w3_ref[...], axis=-1, keepdims=True) + b3_ref[...]  # (TB, 1)
    out_ref[...] = q.astype(out_ref.dtype)


def _choose_tb(batch):
    b8 = _round_up(batch, 8)
    if b8 <= 256:
        return b8                                   # single tile for small batches
    # >= 2 grid steps so the "parallel" batch axis shards across v7x's 2 TCs;
    # per-step overhead (~0.35 us) is negligible vs the compute of such tiles.
    return min(_round_up(pl.cdiv(b8, 2), 8), TB_CAP)


def critic_forward(x, action, kparams):
    """x: (B, 8) f32, action: (B, 2) f32 -> Q: (B, 1) f32."""
    w1, b1, w2, b2, w3, b3 = kparams
    B = x.shape[0]

    tb = _choose_tb(B)
    b_pad = _round_up(B, tb)

    # Fold torch.cat([x, action], dim=1) into one small XLA op; pad feature
    # dim 10 -> 16 and batch dim to the tile boundary.
    xa = jnp.concatenate([x, action], axis=1)                     # (B, 10)
    xa = jnp.pad(xa, ((0, b_pad - B), (0, IN_PAD - xa.shape[1])))  # (b_pad, 16)

    grid = (b_pad // tb,)
    resident = lambda arr: pl.BlockSpec(arr.shape, lambda i: (0, 0))

    # Advisory cost estimate for XLA scheduling around the custom call.
    mxu_elems = IN_PAD * H1_PAD + H1_PAD * H2_PAD
    cost = pl.CostEstimate(
        flops=2 * b_pad * (mxu_elems + H2_PAD),
        transcendentals=0,
        bytes_accessed=(2 * mxu_elems                          # bf16 weights
                        + 4 * (H1_PAD + 2 * H2_PAD + 1)         # f32 biases + w3 row
                        + 4 * b_pad * (IN_PAD + 1)))            # input + output

    out = pl.pallas_call(
        critic_kernel,
        out_shape=jax.ShapeDtypeStruct((b_pad, 1), jnp.float32),
        grid_spec=pltpu.PrefetchScalarGridSpec(
            num_scalar_prefetch=0,
            grid=grid,
            in_specs=[
                pl.BlockSpec((tb, IN_PAD), lambda i: (i, 0)),   # [state|action] tile
                resident(w1), resident(b1),                     # pinned weights/biases
                resident(w2), resident(b2),
                resident(w3), resident(b3),
            ],
            out_specs=pl.BlockSpec((tb, 1), lambda i: (i, 0)),  # lane dim == full dim
        ),
        compiler_params=pltpu.CompilerParams(
            dimension_semantics=("parallel",),
            vmem_limit_bytes=32 * 1024 * 1024),
        cost_estimate=cost,
    )(xa, w1, b1, w2, b2, w3, b3)

    return out[:B]


def init_params(key):
    """Logical f32 params, PyTorch nn.Linear default init:
    U(-1/sqrt(fan_in), +1/sqrt(fan_in)) for weight and bias.
    Weights stored as (in_features, out_features) so forward is x @ W + b."""
    in_dim = STATE_DIM + ACTION_DIM
    dims = [(in_dim, HIDDEN[0]), (HIDDEN[0], HIDDEN[1]), (HIDDEN[1], 1)]
    params = []
    for fan_in, fan_out in dims:
        key, kw, kb = jax.random.split(key, 3)
        bound = 1.0 / (fan_in ** 0.5)
        w = jax.random.uniform(kw, (fan_in, fan_out), jnp.float32, -bound, bound)
        b = jax.random.uniform(kb, (fan_out,), jnp.float32, -bound, bound)
        params.extend([w, b])
    return tuple(params)


def prepare_kernel_params(params):
    """Zero-pad to lane-aligned shapes. W1/W2 become bf16 MXU operands
    (biases stay f32); W3 becomes a resident f32 row for the VPU layer-3."""
    w1, b1, w2, b2, w3, b3 = params

    def pad2(a, rows, cols):
        return jnp.pad(a, ((0, rows - a.shape[0]), (0, cols - a.shape[1])))

    w1p = pad2(w1, IN_PAD, H1_PAD).astype(jnp.bfloat16)    # (16, 512)
    b1p = pad2(b1[None, :], 1, H1_PAD)                     # (1, 512) f32
    w2p = pad2(w2, H1_PAD, H2_PAD).astype(jnp.bfloat16)    # (512, 384)
    b2p = pad2(b2[None, :], 1, H2_PAD)                     # (1, 384) f32
    w3p = pad2(w3.T, 1, H2_PAD)                            # (1, 384) f32 row
    b3p = b3[None, :]                                      # (1, 1) f32
    return (w1p, b1p, w2p, b2p, w3p, b3p)


def reference_forward(x, action, params):
    w1, b1, w2, b2, w3, b3 = params
    xa = jnp.concatenate([x, action], axis=1)
    h = jnp.maximum(xa @ w1 + b1, 0.0)
    h = jnp.maximum(h @ w2 + b2, 0.0)
    return h @ w3 + b3


if __name__ == "__main__":
    key = jax.random.PRNGKey(0)
    k_params, k_x, k_a = jax.random.split(key, 3)

    params = init_params(k_params)            # logical f32 (for reference)
    kparams = prepare_kernel_params(params)   # padded / bf16 kernel params

    # Small batch: single tile.
    batch = 8
    x = jax.random.normal(k_x, (batch, STATE_DIM), jnp.float32)
    action = jax.random.uniform(k_a, (batch, ACTION_DIM), jnp.float32, -1.0, 1.0)

    q = jax.block_until_ready(critic_forward(x, action, kparams))
    ref = reference_forward(x, action, params)
    assert q.shape == (batch, 1)
    assert jnp.allclose(q, ref, atol=2e-2, rtol=2e-2), "mismatch vs JAX reference"

    # Batch that is not a multiple of 8: exercises the row-padding path.
    batch2 = 20
    k_x2, k_a2 = jax.random.split(jax.random.PRNGKey(1))
    x2 = jax.random.normal(k_x2, (batch2, STATE_DIM), jnp.float32)
    a2 = jax.random.uniform(k_a2, (batch2, ACTION_DIM), jnp.float32, -1.0, 1.0)
    q2 = jax.block_until_ready(critic_forward(x2, a2, kparams))
    ref2 = reference_forward(x2, a2, params)
    assert q2.shape == (batch2, 1)
    assert jnp.allclose(q2, ref2, atol=2e-2, rtol=2e-2), "mismatch (padded batch)"

    # Batch large enough to trigger the 2-step grid (v7x megacore path).
    batch3 = 300
    k_x3, k_a3 = jax.random.split(jax.random.PRNGKey(2))
    x3 = jax.random.normal(k_x3, (batch3, STATE_DIM), jnp.float32)
    a3 = jax.random.uniform(k_a3, (batch3, ACTION_DIM), jnp.float32, -1.0, 1.0)
    q3 = jax.block_until_ready(critic_forward(x3, a3, kparams))
    ref3 = reference_forward(x3, a3, params)
    assert q3.shape == (batch3, 1)
    assert jnp.allclose(q3, ref3, atol=2e-2, rtol=2e-2), "mismatch (multi-tile)"

    print("KERNEL_OK")
</pallas_src>

<mosaic_0001>
module attributes {stable_mosaic.version = 11 : i64} {
  func.func @critic_kernel(%arg0: i32, %arg1: memref<8x16xf32, #tpu.memory_space<vmem>>, %arg2: memref<16x512xbf16, #tpu.memory_space<vmem>>, %arg3: memref<1x512xf32, #tpu.memory_space<vmem>>, %arg4: memref<512x384xbf16, #tpu.memory_space<vmem>>, %arg5: memref<1x384xf32, #tpu.memory_space<vmem>>, %arg6: memref<1x384xf32, #tpu.memory_space<vmem>>, %arg7: memref<1x1xf32, #tpu.memory_space<vmem>>, %arg8: memref<8x1xf32, #tpu.memory_space<vmem>>) attributes {dimension_semantics = [#tpu.dimension_semantics<parallel>], iteration_bounds = array<i64: 1>, scalar_prefetch = 0 : i64, scratch_operands = 0 : i64, tpu.core_type = #tpu.core_type<tc>, window_params = [{transform_indices = @transform_0, window_bounds = array<i64: 8, 16>}, {pipeline_mode = #tpu.pipeline_mode<synchronous>, transform_indices = @transform_1, window_bounds = array<i64: 16, 512>}, {pipeline_mode = #tpu.pipeline_mode<synchronous>, transform_indices = @transform_2, window_bounds = array<i64: 1, 512>}, {pipeline_mode = #tpu.pipeline_mode<synchronous>, transform_indices = @transform_3, window_bounds = array<i64: 512, 384>}, {pipeline_mode = #tpu.pipeline_mode<synchronous>, transform_indices = @transform_4, window_bounds = array<i64: 1, 384>}, {pipeline_mode = #tpu.pipeline_mode<synchronous>, transform_indices = @transform_5, window_bounds = array<i64: 1, 384>}, {pipeline_mode = #tpu.pipeline_mode<synchronous>, transform_indices = @transform_6, window_bounds = array<i64: 1, 1>}, {transform_indices = @transform_7, window_bounds = array<i64: 8, 1>}]} {
    %c0 = arith.constant 0 : index
    %c0_0 = arith.constant 0 : index
    %0 = vector.load %arg1[%c0, %c0_0] : memref<8x16xf32, #tpu.memory_space<vmem>>, vector<8x16xf32>
    %1 = arith.truncf %0 : vector<8x16xf32> to vector<8x16xbf16>
    %c0_1 = arith.constant 0 : index
    %c0_2 = arith.constant 0 : index
    %2 = vector.load %arg2[%c0_1, %c0_2] : memref<16x512xbf16, #tpu.memory_space<vmem>>, vector<16x512xbf16>
    %cst = arith.constant dense<0.000000e+00> : vector<8x512xf32>
    %3 = tpu.matmul %1, %2, %cst {dimension_numbers = #tpu.dot_dimension_numbers<[1], [0], [0], [1], [0, 0, 1, 1], [], []>} : vector<8x16xbf16>, vector<16x512xbf16>, vector<8x512xf32> -> vector<8x512xf32>
    %c0_3 = arith.constant 0 : index
    %c0_4 = arith.constant 0 : index
    %4 = vector.load %arg3[%c0_3, %c0_4] : memref<1x512xf32, #tpu.memory_space<vmem>>, vector<1x512xf32>
    %5 = vector.broadcast %4 : vector<1x512xf32> to vector<8x512xf32>
    %6 = arith.addf %3, %5 : vector<8x512xf32>
    %cst_5 = arith.constant 0.000000e+00 : f32
    %7 = vector.broadcast %cst_5 : f32 to vector<8x512xf32>
    %8 = arith.maximumf %6, %7 : vector<8x512xf32>
    %9 = arith.truncf %8 : vector<8x512xf32> to vector<8x512xbf16>
    %c0_6 = arith.constant 0 : index
    %c0_7 = arith.constant 0 : index
    %10 = vector.load %arg4[%c0_6, %c0_7] : memref<512x384xbf16, #tpu.memory_space<vmem>>, vector<512x384xbf16>
    %cst_8 = arith.constant dense<0.000000e+00> : vector<8x384xf32>
    %11 = tpu.matmul %9, %10, %cst_8 {dimension_numbers = #tpu.dot_dimension_numbers<[1], [0], [0], [1], [0, 0, 1, 1], [], []>} : vector<8x512xbf16>, vector<512x384xbf16>, vector<8x384xf32> -> vector<8x384xf32>
    %c0_9 = arith.constant 0 : index
    %c0_10 = arith.constant 0 : index
    %12 = vector.load %arg5[%c0_9, %c0_10] : memref<1x384xf32, #tpu.memory_space<vmem>>, vector<1x384xf32>
    %13 = vector.broadcast %12 : vector<1x384xf32> to vector<8x384xf32>
    %14 = arith.addf %11, %13 : vector<8x384xf32>
    %cst_11 = arith.constant 0.000000e+00 : f32
    %15 = vector.broadcast %cst_11 : f32 to vector<8x384xf32>
    %16 = arith.maximumf %14, %15 : vector<8x384xf32>
    %c0_12 = arith.constant 0 : index
    %c0_13 = arith.constant 0 : index
    %17 = vector.load %arg6[%c0_12, %c0_13] : memref<1x384xf32, #tpu.memory_space<vmem>>, vector<1x384xf32>
    %18 = vector.broadcast %17 : vector<1x384xf32> to vector<8x384xf32>
    %19 = arith.mulf %16, %18 : vector<8x384xf32>
    %cst_14 = arith.constant dense<0.000000e+00> : vector<8xf32>
    %20 = vector.multi_reduction <add>, %19, %cst_14 [1] : vector<8x384xf32> to vector<8xf32>
    %21 = vector.shape_cast %20 : vector<8xf32> to vector<8x1xf32>
    %c0_15 = arith.constant 0 : index
    %c0_16 = arith.constant 0 : index
    %22 = vector.load %arg7[%c0_15, %c0_16] : memref<1x1xf32, #tpu.memory_space<vmem>>, vector<1x1xf32>
    %23 = vector.broadcast %22 : vector<1x1xf32> to vector<8x1xf32>
    %24 = arith.addf %21, %23 : vector<8x1xf32>
    %c0_17 = arith.constant 0 : index
    %c0_18 = arith.constant 0 : index
    %25 = vector.load %arg8[%c0_17, %c0_18] : memref<8x1xf32, #tpu.memory_space<vmem>>, vector<8x1xf32>
    tpu.vector_store %arg8[%c0_17, %c0_18], %24 {strides = array<i32>} : memref<8x1xf32, #tpu.memory_space<vmem>>, vector<8x1xf32>,
    return
  }
  func.func @transform_0(%arg0: i32) -> (i32, i32) {
    %c0_i32 = arith.constant 0 : i32
    %c0_i32_0 = arith.constant 0 : i32
    return %arg0, %c0_i32 : i32, i32
  }
  func.func @transform_1(%arg0: i32) -> (i32, i32) {
    %c0_i32 = arith.constant 0 : i32
    %c0_i32_0 = arith.constant 0 : i32
    %c0_i32_1 = arith.constant 0 : i32
    return %c0_i32, %c0_i32_0 : i32, i32
  }
  func.func @transform_2(%arg0: i32) -> (i32, i32) {
    %c0_i32 = arith.constant 0 : i32
    %c0_i32_0 = arith.constant 0 : i32
    %c0_i32_1 = arith.constant 0 : i32
    return %c0_i32, %c0_i32_0 : i32, i32
  }
  func.func @transform_3(%arg0: i32) -> (i32, i32) {
    %c0_i32 = arith.constant 0 : i32
    %c0_i32_0 = arith.constant 0 : i32
    %c0_i32_1 = arith.constant 0 : i32
    return %c0_i32, %c0_i32_0 : i32, i32
  }
  func.func @transform_4(%arg0: i32) -> (i32, i32) {
    %c0_i32 = arith.constant 0 : i32
    %c0_i32_0 = arith.constant 0 : i32
    %c0_i32_1 = arith.constant 0 : i32
    return %c0_i32, %c0_i32_0 : i32, i32
  }
  func.func @transform_5(%arg0: i32) -> (i32, i32) {
    %c0_i32 = arith.constant 0 : i32
    %c0_i32_0 = arith.constant 0 : i32
    %c0_i32_1 = arith.constant 0 : i32
    return %c0_i32, %c0_i32_0 : i32, i32
  }
  func.func @transform_6(%arg0: i32) -> (i32, i32) {
    %c0_i32 = arith.constant 0 : i32
    %c0_i32_0 = arith.constant 0 : i32
    %c0_i32_1 = arith.constant 0 : i32
    return %c0_i32, %c0_i32_0 : i32, i32
  }
  func.func @transform_7(%arg0: i32) -> (i32, i32) {
    %c0_i32 = arith.constant 0 : i32
    %c0_i32_0 = arith.constant 0 : i32
    return %arg0, %c0_i32 : i32, i32
  }
}

</mosaic_0001>

<bundles_post_ra>
// kernel: tpu_custom_call.1
= control target key start
LH: loop header
LB: loop body
LE: loop exit
PB: predicated region body
PF: predicated region fallthrough
CT: control target
= control target key end

     0   :  { %s1559_s0 = inlined_call_operand.hbm [shape: f32[8,16], index: 0, kind: input, shape index: {}]   ;;  %s1560_s1 = inlined_call_operand.hbm [shape: bf16[16,512], index: 1, kind: input, shape index: {}]   ;;  %s1561_s2 = inlined_call_operand.vmem [shape: f32[1,512], index: 2, kind: input, shape index: {}]   ;;  %s1562_s3 = inlined_call_operand.hbm [shape: bf16[512,384], index: 3, kind: input, shape index: {}]   ;;  %s1563_s4 = inlined_call_operand.vmem [shape: f32[1,384], index: 4, kind: input, shape index: {}]   ;;  %s1564_s5 = inlined_call_operand.vmem [shape: f32[1,384], index: 5, kind: input, shape index: {}]   ;;  %s1565_s6 = inlined_call_operand.<no memory space> [shape: f32[1,1], index: 6, kind: input, shape index: {}]   ;;  %s1566_s7 = inlined_call_operand.vmem [shape: f32[8,1], index: 7, kind: output, shape index: {}]  }
   0x1   :  { %v12_v0 = vstv %s1565_s6 }
   0x2   :  { %13 = vst [vmem:[#allocation2] sm:$0x1] %v12_v0 }
   0x3   :  { %14 = vsyncpa [#allocation4], 0 }
   0x4   :  { %15 = vsyncpa [#allocation6], 0  ;;  %s1437_s26 = smov [#allocation5]   ;;  %s1367_s30 = scalar_lea.hbm %s1560_s1, 512 }
   0x5   :  { %s31_s27 = sshll.u32 %s1437_s26, 4  ;;  %p1368_p0 = scmp.ne.s32.totalorder %s1560_s1, %s1367_s30  ;;  %s32_s27 = int_to_ptr.vmem [resolvable:$true] %s31_s27 }
   0x6   :  { %p1371_p1 = scmp.lt.u32.totalorder %s1367_s30, %s1560_s1 }
   0x8   :  { %p1373_p2 = pnand %p1371_p1, %p1368_p0 }
   0xa   :  { %1376 = shalt.err (!%p1373_p2)
}
   0xb   :  { %s1377_s6 = scalar_lea.vmem %s32_s27, 512  ;;  %p1382_p4 = scmp.lt.s32.totalorder %s32_s27, %s32_s27 }
   0xc   :  { %p1378_p3 = scmp.ne.s32.totalorder %s32_s27, %s1377_s6  ;;  %p1383_p5 = scmp.lt.s32.totalorder %s1377_s6, %s1377_s6 }
   0xe   :  { %p1384_p6 = por %p1383_p5, %p1382_p4 }
  0x10   :  { %p1385_p7 = pnand %p1384_p6, %p1378_p3 }
  0x12   :  { %1388 = shalt.err (!%p1385_p7)
}
  0x13   :  { %s1438_s12 = smov 256   ;;  %s1439_s13 = smov 16  }
  0x14   :  { %37 = dma.hbm_to_vmem [thread:$0]  %s1560_s1, 512, %s32_s27, [#allocation6], %s1438_s12, %s1438_s12, %s1439_s13  }
  0x15   :  { %s1440_s16 = smov [#allocation3]   ;;  %s1441_s18 = smov [#allocation7]  }
  0x16   :  { %s22_s17 = sshll.u32 %s1440_s16, 4  ;;  %s45_s19 = sshll.u32 %s1441_s18, 4  ;;  %s23_s17 = int_to_ptr.vmem [resolvable:$true] %s22_s17  ;;  %s46_s19 = int_to_ptr.vmem [resolvable:$true] %s45_s19 }
  0x17   :  { %s1389_s22 = scalar_lea.hbm %s1559_s0, 128 }
  0x18   :  { %p1390_p8 = scmp.ne.s32.totalorder %s1559_s0, %s1389_s22  ;;  %p1393_p9 = scmp.lt.u32.totalorder %s1389_s22, %s1559_s0 }
  0x1a   :  { %p1395_p10 = pnand %p1393_p9, %p1390_p8 }
  0x1c   :  { %1398 = shalt.err (!%p1395_p10)
}
  0x1d   :  { %s1399_s1 = scalar_lea.vmem %s23_s17, 128  ;;  %p1404_p12 = scmp.lt.s32.totalorder %s23_s17, %s23_s17 }
  0x1e   :  { %p1400_p11 = scmp.ne.s32.totalorder %s23_s17, %s1399_s1  ;;  %p1405_p13 = scmp.lt.s32.totalorder %s1399_s1, %s1399_s1 }
  0x20   :  { %p1406_p0 = por %p1405_p13, %p1404_p12 }
  0x22   :  { %p1407_p1 = pnand %p1406_p0, %p1400_p11 }
  0x24   :  { %1410 = shalt.err (!%p1407_p1)
}
  0x25   :  { %25 = dma.hbm_to_vmem [thread:$0]  %s1559_s0, 128, %s23_s17, [#allocation4]  }
  0x26   :  { %s1411_s8 = scalar_lea.hbm %s1562_s3, 12288 }
  0x27   :  { %p1412_p2 = scmp.ne.s32.totalorder %s1562_s3, %s1411_s8  ;;  %p1415_p3 = scmp.lt.u32.totalorder %s1411_s8, %s1562_s3 }
  0x29   :  { %p1417_p4 = pnand %p1415_p3, %p1412_p2 }
  0x2b   :  { %1420 = shalt.err (!%p1417_p4)
}
  0x2c   :  { %s1421_s12 = scalar_lea.vmem %s46_s19, 12288  ;;  %p1426_p6 = scmp.lt.s32.totalorder %s46_s19, %s46_s19 }
  0x2d   :  { %p1422_p5 = scmp.ne.s32.totalorder %s46_s19, %s1421_s12  ;;  %p1427_p7 = scmp.lt.s32.totalorder %s1421_s12, %s1421_s12 }
  0x2f   :  { %p1428_p8 = por %p1427_p7, %p1426_p6 }
  0x31   :  { %p1429_p9 = pnand %p1428_p8, %p1422_p5 }
  0x33   :  { %1432 = shalt.err (!%p1429_p9)
}
  0x34   :  { %s1442_s0 = smov 192   ;;  %s1443_s13 = smov 12  }
  0x35   :  { %51 = dma.hbm_to_vmem [thread:$0]  %s1562_s3, 12288, %s46_s19, [#allocation6], %s1442_s0, %s1442_s0, %s1443_s13  }
  0x36   :  { %1433 = dma.done.wait [#allocation4], 128  }
  0x37   :  { %1434 = vsyncadd [#allocation4], 4294967168 }
  0x38   :  { %1435 = dma.done.wait [#allocation6], 12800  }
  0x39   :  { %1436 = vsyncadd [#allocation6], 4294954496  ;;  %v1444_v1 = vmov 0   ;;  %v1233_v2 = vld [vmem:[#allocation5 + $0x4] ss:$16 sps:$4 sm:$0xff]   ;;  %v68_v4 = vld [vmem:[#allocation3] sm:$0xff]  ;;  %v76_v58 = vlaneseq }
  0x3a   :  { %152 = vmatprep.mubr.bf16.mxu1 %v1444_v1  ;;  %v1235_v3 = vld [vmem:[#allocation5] ss:$16 sps:$4 sm:$0xff]   ;;  %120 = vmatprep.subr.bf16.mxu1 %v1233_v2  ;;  %v69_v5 = vpack.c.bf16 %v68_v4, %v68_v4  ;;  %v1236_v6 = vld [vmem:[#allocation5 + $0x8] ss:$16 sps:$4 sm:$0xff]   ;;  %v1238_v7 = vld [vmem:[#allocation5 + $0xc] ss:$16 sps:$4 sm:$0xff]  }
  0x3b   :  { %121 = vmatpush1.bf16.msra.mxu1 %v1235_v3  ;;  %vm116_vm0 = vcmask 130048   ;;  %v1239_v8 = vld [vmem:[#allocation7 + $0x4] ss:$12 sps:$4 sm:$0xff]   ;;  %v1241_v9 = vld [vmem:[#allocation7] ss:$12 sps:$4 sm:$0xff]   ;;  %v77_v59 = vshrl.u32 %v76_v58, 7 }
  0x3c   :  { %161 = vmatprep.subr.bf16.mxu1 %v1238_v7  ;;  %867 = vmatprep.subr.bf16.mxu0 %v1239_v8  ;;  %v1242_v10 = vld [vmem:[#allocation7 + $0x1c] ss:$12 sps:$4 sm:$0xff]   ;;  %v1244_v11 = vld [vmem:[#allocation7 + $0x18] ss:$12 sps:$4 sm:$0xff]   ;;  %v1245_v12 = vld [vmem:[#allocation7 + $0x34] ss:$12 sps:$4 sm:$0xff]  }
  0x3d   :  { %868 = vmatpush1.bf16.msra.mxu0 %v1241_v9  ;;  %v1247_v13 = vld [vmem:[#allocation7 + $0x30] ss:$12 sps:$4 sm:$0xff]   ;;  %v1248_v14 = vld [vmem:[#allocation7 + $0x4c] ss:$12 sps:$4 sm:$0xff]   ;;  %v1250_v15 = vld [vmem:[#allocation7 + $0x48] ss:$12 sps:$4 sm:$0xff]  }
  0x3e   :  { %1076 = vmatmul.mubr.msk.bf16.vlgmr.msra.gmra.mrb[0].mxu1 %vm116_vm0, %v69_v5  ;;  %869 = vmatprep.subr.bf16.mxu0 %v1242_v10  ;;  %v1251_v16 = vld [vmem:[#allocation7 + $0x64] ss:$12 sps:$4 sm:$0xff]   ;;  %v1265_v17 = vld [vmem:[#allocation7 + $0xc8] ss:$12 sps:$4 sm:$0xff]   ;;  %v1253_v19 = vld [vmem:[#allocation7 + $0x60] ss:$12 sps:$4 sm:$0xff]  }
  0x3f   :  { %162 = vmatpush1.bf16.msra.mxu1 %v1236_v6  ;;  %193 = vmatprep.mubr.bf16.mxu1 %v1444_v1  ;;  %v1267_v18 = vld [vmem:[#allocation7 + $0x8] ss:$12 sps:$4 sm:$0xff]   ;;  %v1270_v20 = vld [vmem:[#allocation7 + $0xe0] ss:$12 sps:$4 sm:$0xff]   ;;  %v1256_v23 = vld [vmem:[#allocation7 + $0x78] ss:$12 sps:$4 sm:$0xff]  }
  0x40   :  { %1175 = vmatprep.subr.bf16.mxu1 %v1265_v17  ;;  %v1254_v21 = vld [vmem:[#allocation7 + $0x7c] ss:$12 sps:$4 sm:$0xff]   ;;  %v1272_v22 = vld [vmem:[#allocation7 + $0x20] ss:$12 sps:$4 sm:$0xff]   ;;  %v1275_v25 = vld [vmem:[#allocation7 + $0xf8] ss:$12 sps:$4 sm:$0xff]  }
  0x41   :  { %870 = vmatpush1.bf16.msra.mxu0 %v1244_v11  ;;  %v1257_v24 = vld [vmem:[#allocation7 + $0x94] ss:$12 sps:$4 sm:$0xff]   ;;  %v1277_v26 = vld [vmem:[#allocation7 + $0x38] ss:$12 sps:$4 sm:$0xff]   ;;  %v1259_v27 = vld [vmem:[#allocation7 + $0x90] ss:$12 sps:$4 sm:$0xff]  }
  0x42   :  { %871 = vmatprep.subr.bf16.mxu0 %v1245_v12  ;;  %v1280_v28 = vld [vmem:[#allocation7 + $0x110] ss:$12 sps:$4 sm:$0xff]   ;;  %v1260_v30 = vld [vmem:[#allocation7 + $0xac] ss:$12 sps:$4 sm:$0xff]   ;;  %v1285_v31 = vld [vmem:[#allocation7 + $0x128] ss:$12 sps:$4 sm:$0xff]  }
  0x43   :  { %v1282_v29 = vld [vmem:[#allocation7 + $0x50] ss:$12 sps:$4 sm:$0xff]   ;;  %v1262_v32 = vld [vmem:[#allocation7 + $0xa8] ss:$12 sps:$4 sm:$0xff]   ;;  %v1266_v35 = vld [vmem:[#allocation7 + $0xc0] ss:$12 sps:$4 sm:$0xff]  }
  0x44   :  { %v1287_v33 = vld [vmem:[#allocation7 + $0x68] ss:$12 sps:$4 sm:$0xff]   ;;  %v1263_v34 = vld [vmem:[#allocation7 + $0xc4] ss:$12 sps:$4 sm:$0xff]   ;;  %v1290_v36 = vld [vmem:[#allocation7 + $0x140] ss:$12 sps:$4 sm:$0xff]  }
  0x45   :  { %872 = vmatpush1.bf16.msra.mxu0 %v1247_v13  ;;  %v1268_v37 = vld [vmem:[#allocation7 + $0xdc] ss:$12 sps:$4 sm:$0xff]   ;;  %v1292_v38 = vld [vmem:[#allocation7 + $0x80] ss:$12 sps:$4 sm:$0xff]   ;;  %v1271_v39 = vld [vmem:[#allocation7 + $0xd8] ss:$12 sps:$4 sm:$0xff]  }
  0x46   :  { %1077 = vmatmul.mubr.msk.bf16.vlgmr.msra.gmra.mrb[4].mxu1 %vm116_vm0, %v69_v5  ;;  %873 = vmatprep.subr.bf16.mxu0 %v1248_v14  ;;  %v1273_v40 = vld [vmem:[#allocation7 + $0xf4] ss:$12 sps:$4 sm:$0xff]   ;;  %v1276_v41 = vld [vmem:[#allocation7 + $0xf0] ss:$12 sps:$4 sm:$0xff]   ;;  %v1278_v42 = vld [vmem:[#allocation7 + $0x10c] ss:$12 sps:$4 sm:$0xff]  }
  0x47   :  { %1176 = vmatpush3.bf16.msra.mxu1 %v1267_v18  ;;  %v1281_v43 = vld [vmem:[#allocation7 + $0x108] ss:$12 sps:$4 sm:$0xff]   ;;  %v1283_v44 = vld [vmem:[#allocation7 + $0x124] ss:$12 sps:$4 sm:$0xff]   ;;  %v1286_v45 = vld [vmem:[#allocation7 + $0x120] ss:$12 sps:$4 sm:$0xff]  }
  0x48   :  { %1177 = vmatprep.subr.bf16.mxu1 %v1270_v20  ;;  %v1288_v46 = vld [vmem:[#allocation7 + $0x13c] ss:$12 sps:$4 sm:$0xff]   ;;  %v1291_v47 = vld [vmem:[#allocation7 + $0x138] ss:$12 sps:$4 sm:$0xff]   ;;  %v1293_v48 = vld [vmem:[#allocation7 + $0x154] ss:$12 sps:$4 sm:$0xff]  }
  0x49   :  { %874 = vmatpush1.bf16.msra.mxu0 %v1250_v15  ;;  %v1295_v49 = vld [vmem:[#allocation7 + $0x158] ss:$12 sps:$4 sm:$0xff]   ;;  %v1296_v50 = vld [vmem:[#allocation7 + $0x150] ss:$12 sps:$4 sm:$0xff]   ;;  %v1301_v54 = vld [vmem:[#allocation7 + $0x168] ss:$12 sps:$4 sm:$0xff]  }
  0x4a   :  { %875 = vmatprep.subr.bf16.mxu0 %v1251_v16  ;;  %v1297_v51 = vld [vmem:[#allocation7 + $0x98] ss:$12 sps:$4 sm:$0xff]   ;;  %v1300_v53 = vld [vmem:[#allocation7 + $0x170] ss:$12 sps:$4 sm:$0xff]   ;;  %v1306_v57 = vld [vmem:[#allocation7 + $0x248] ss:$12 sps:$4 sm:$0xff]  }
  0x4b   :  { %1178 = vmatpush3.bf16.msra.mxu1 %v1272_v22  ;;  %v1298_v52 = vld [vmem:[#allocation7 + $0x16c] ss:$12 sps:$4 sm:$0xff]   ;;  %v1302_v55 = vld [vmem:[#allocation7 + $0xb0] ss:$12 sps:$4 sm:$0xff]   ;;  %v1526_v60 = vsub.s32 0, %v77_v59  ;;  %v1533_v62 = vsub.s32 1, %v77_v59 }
  0x4c   :  { %1179 = vmatprep.subr.bf16.mxu1 %v1275_v25  ;;  %v1305_v56 = vld [vmem:[#allocation7 + $0x184] ss:$12 sps:$4 sm:$0xff]   ;;  %v1531_v61 = vld [vmem:[%s1561_s2] sm:$0xf]  ;;  %v90_v6 = vsub.s32 3, %v77_v59  ;;  %vm1064_vm1 = vcmask 7168  }
  0x4d   :  { %876 = vmatpush1.bf16.msra.mxu0 %v1253_v19  ;;  %v79_v63 = vrot.slane %v1531_v61, %v1526_v60  ;;  %v83_v0 = vrot.slane %v1531_v61, %v1533_v62  ;;  %v1303_v11 = vld [vmem:[#allocation7 + $0x180] ss:$12 sps:$4 sm:$0xff]   ;;  %v1307_v12 = vld [vmem:[#allocation7 + $0x188] ss:$12 sps:$4 sm:$0xff]   ;;  %v1308_v19 = vld [vmem:[#allocation7 + $0x198] ss:$12 sps:$4 sm:$0xff]  }
  0x4e   :  { %877 = vmatprep.subr.bf16.mxu0 %v1254_v21  ;;  %v91_v13 = vrot.slane %v1531_v61, %v90_v6  ;;  %v1310_v15 = vld [vmem:[#allocation7 + $0x19c] ss:$12 sps:$4 sm:$0xff]   ;;  %v1311_v16 = vld [vmem:[#allocation7 + $0x260] ss:$12 sps:$4 sm:$0xff]   ;;  %v1346_v58 = vld [vmem:[#allocation7 + $0x258] ss:$12 sps:$4 sm:$0xff]  }
  0x4f   :  { %1180 = vmatpush3.bf16.msra.mxu1 %v1277_v26  ;;  %v1312_v20 = vld [vmem:[#allocation7 + $0x1a0] ss:$12 sps:$4 sm:$0xff]   ;;  %v1361_v6 = vld [vmem:[#allocation7 + $0x2d0] ss:$12 sps:$4 sm:$0xff]  }
  0x50   :  { %1181 = vmatprep.subr.bf16.mxu1 %v1280_v28  ;;  %v1317_v28 = vld [vmem:[#allocation7 + $0x1b8] ss:$12 sps:$4 sm:$0xff]  }
  0x51   :  { %878 = vmatpush1.bf16.msra.mxu0 %v1256_v23  ;;  %v1315_v23 = vld [vmem:[#allocation7 + $0x1b4] ss:$12 sps:$4 sm:$0xff]  }
  0x52   :  { %879 = vmatprep.subr.bf16.mxu0 %v1257_v24  ;;  %v1316_v24 = vld [vmem:[#allocation7 + $0x278] ss:$12 sps:$4 sm:$0xff]  }
  0x53   :  { %1182 = vmatpush3.bf16.msra.mxu1 %v1282_v29 }
  0x54   :  { %1183 = vmatprep.subr.bf16.mxu1 %v1285_v31  ;;  %v1321_v31 = vld [vmem:[#allocation7 + $0x290] ss:$12 sps:$4 sm:$0xff]  }
  0x55   :  { %880 = vmatpush1.bf16.msra.mxu0 %v1259_v27  ;;  %v1313_v27 = vld [vmem:[#allocation7 + $0x1b0] ss:$12 sps:$4 sm:$0xff]  }
  0x56   :  { %881 = vmatprep.subr.bf16.mxu0 %v1260_v30  ;;  %v1320_v30 = vld [vmem:[#allocation7 + $0x1cc] ss:$12 sps:$4 sm:$0xff]  }
  0x57   :  { %1184 = vmatpush3.bf16.msra.mxu1 %v1287_v33  ;;  %v1322_v33 = vld [vmem:[#allocation7 + $0x1d0] ss:$12 sps:$4 sm:$0xff]  }
  0x58   :  { %1185 = vmatprep.subr.bf16.mxu1 %v1290_v36  ;;  %v1540_v36 = vsub.s32 2, %v77_v59  ;;  %v1351_v59 = vld [vmem:[#allocation7 + $0x274] ss:$12 sps:$4 sm:$0xff]  }
  0x59   :  { %882 = vmatpush1.bf16.msra.mxu0 %v1262_v32  ;;  %v1318_v32 = vld [vmem:[#allocation7 + $0x1c8] ss:$12 sps:$4 sm:$0xff]  }
  0x5a   :  { %883 = vmatprep.subr.bf16.mxu0 %v1263_v34  ;;  %v1325_v34 = vld [vmem:[#allocation7 + $0x1e4] ss:$12 sps:$4 sm:$0xff]  }
  0x5b   :  { %1186 = vmatpush3.bf16.msra.mxu1 %v1292_v38  ;;  %v1327_v38 = vld [vmem:[#allocation7 + $0x1e8] ss:$12 sps:$4 sm:$0xff]  }
  0x5c   :  { %1187 = vmatprep.subr.bf16.mxu1 %v1295_v49  ;;  %v1340_v49 = vld [vmem:[#allocation7 + $0x22c] ss:$12 sps:$4 sm:$0xff]  }
  0x5d   :  { %884 = vmatpush1.bf16.msra.mxu0 %v1266_v35  ;;  %v1326_v35 = vld [vmem:[#allocation7 + $0x2a8] ss:$12 sps:$4 sm:$0xff]  }
  0x5e   :  { %885 = vmatprep.subr.bf16.mxu0 %v1268_v37  ;;  %v1323_v37 = vld [vmem:[#allocation7 + $0x1e0] ss:$12 sps:$4 sm:$0xff]  }
  0x5f   :  { %1188 = vmatpush3.bf16.msra.mxu1 %v1297_v51 }
  0x60   :  { %1189 = vmatprep.subr.bf16.mxu1 %v1300_v53  ;;  %v1342_v53 = vld [vmem:[#allocation7 + $0x230] ss:$12 sps:$4 sm:$0xff]  }
  0x61   :  { %886 = vmatpush1.bf16.msra.mxu0 %v1271_v39  ;;  %v1330_v39 = vld [vmem:[#allocation7 + $0x1fc] ss:$12 sps:$4 sm:$0xff]  }
  0x62   :  { %887 = vmatprep.subr.bf16.mxu0 %v1273_v40  ;;  %v1331_v40 = vld [vmem:[#allocation7 + $0x2c0] ss:$12 sps:$4 sm:$0xff]  }
  0x63   :  { %1190 = vmatpush3.bf16.msra.mxu1 %v1302_v55 }
  0x64   :  { %1197 = vmatprep.subr.bf16.mxu1 %v1306_v57  ;;  %v1348_v57 = vld [vmem:[#allocation7 + $0x25c] ss:$12 sps:$4 sm:$0xff]  }
  0x65   :  { %888 = vmatpush1.bf16.msra.mxu0 %v1276_v41  ;;  %v87_v41 = vrot.slane %v1531_v61, %v1540_v36  ;;  %v1349_v61 = vld [vmem:[#allocation7 + $0x270] ss:$12 sps:$4 sm:$0xff]  }
  0x66   :  { %889 = vmatprep.subr.bf16.mxu0 %v1278_v42  ;;  %v1328_v42 = vld [vmem:[#allocation7 + $0x1f8] ss:$12 sps:$4 sm:$0xff]  }
  0x69   :  { %890 = vmatpush1.bf16.msra.mxu0 %v1281_v43  ;;  %v1332_v43 = vld [vmem:[#allocation7 + $0x200] ss:$12 sps:$4 sm:$0xff]  }
  0x6a   :  { %891 = vmatprep.subr.bf16.mxu0 %v1283_v44  ;;  %v1335_v44 = vld [vmem:[#allocation7 + $0x214] ss:$12 sps:$4 sm:$0xff]  }
  0x6d   :  { %892 = vmatpush1.bf16.msra.mxu0 %v1286_v45  ;;  %v1336_v45 = vld [vmem:[#allocation7 + $0x2d8] ss:$12 sps:$4 sm:$0xff]  }
  0x6e   :  { %893 = vmatprep.subr.bf16.mxu0 %v1288_v46 }
  0x71   :  { %894 = vmatpush1.bf16.msra.mxu0 %v1291_v47  ;;  %v1333_v47 = vld [vmem:[#allocation7 + $0x210] ss:$12 sps:$4 sm:$0xff]  }
  0x72   :  { %895 = vmatprep.subr.bf16.mxu0 %v1293_v48  ;;  %v1337_v48 = vld [vmem:[#allocation7 + $0x218] ss:$12 sps:$4 sm:$0xff]  }
  0x75   :  { %896 = vmatpush1.bf16.msra.mxu0 %v1296_v50  ;;  %v1341_v50 = vld [vmem:[#allocation7 + $0x2f0] ss:$12 sps:$4 sm:$0xff]  }
  0x76   :  { %897 = vmatprep.subr.bf16.mxu0 %v1298_v52  ;;  %v1338_v52 = vld [vmem:[#allocation7 + $0x228] ss:$12 sps:$4 sm:$0xff]  }
  0x79   :  { %898 = vmatpush1.bf16.msra.mxu0 %v1301_v54  ;;  %v1345_v54 = vld [vmem:[#allocation7 + $0x244] ss:$12 sps:$4 sm:$0xff]  }
  0x7a   :  { %908 = vmatprep.subr.bf16.mxu0 %v1305_v56  ;;  %v1343_v56 = vld [vmem:[#allocation7 + $0x240] ss:$12 sps:$4 sm:$0xff]  }
 0x111   :  { %v154_v1 = vpop.f32.mrb[0].mxu1 }
 0x112   :  { %v155_v2 = vadd.f32 %v154_v1, %v79_v63  ;;  %v156_v3 = vpop.f32.mrb[1].mxu1  ;;  %v1354_v63 = vld [vmem:[#allocation7 + $0x28c] ss:$12 sps:$4 sm:$0xff]   ;;  %v1357_v1 = vld [vmem:[#allocation7 + $0x2a4] ss:$12 sps:$4 sm:$0xff]  }
 0x113   :  { %v157_v4 = vadd.f32 %v156_v3, %v83_v0  ;;  %v158_v5 = vpop.f32.mrb[2].mxu1  ;;  %v1352_v0 = vld [vmem:[#allocation7 + $0x288] ss:$12 sps:$4 sm:$0xff]  }
 0x114   :  { %v202_v7 = vmax.f32 %v155_v2, 0.0  ;;  %v159_v8 = vpop.f32.mrb[3].mxu1  ;;  %v1355_v2 = vld [vmem:[#allocation7 + $0x2a0] ss:$12 sps:$4 sm:$0xff]   ;;  %v1360_v3 = vld [vmem:[#allocation7 + $0x2bc] ss:$12 sps:$4 sm:$0xff]  }
 0x115   :  { %v203_v9 = vmax.f32 %v157_v4, 0.0  ;;  %v1358_v4 = vld [vmem:[#allocation7 + $0x2b8] ss:$12 sps:$4 sm:$0xff]   ;;  %v1363_v5 = vld [vmem:[#allocation7 + $0x2d4] ss:$12 sps:$4 sm:$0xff]  }
 0x116   :  { %v206_v14 = vpack.c.bf16 %v202_v7, %v202_v7  ;;  %v1366_v7 = vld [vmem:[#allocation7 + $0x2ec] ss:$12 sps:$4 sm:$0xff]   ;;  %v1364_v8 = vld [vmem:[#allocation7 + $0x2e8] ss:$12 sps:$4 sm:$0xff]  }
 0x117   :  { %v207_v10 = vpack.c.bf16 %v203_v9, %v203_v9 }
 0x119   :  { %899 = vmatprep.mubr.bf16.mxu0 %v207_v10  ;;  %981 = vmatprep.mubr.bf16.mxu1 %v207_v10  ;;  %v195_v17 = vpop.f32.mrb[4].mxu1 }
 0x11a   :  { %900 = vmatmul.mubr.bf16.vlgmr.msra.gmra.mrb[0].mxu0 %v206_v14  ;;  %982 = vmatmul.mubr.bf16.vlgmr.msra.gmra.mrb[8].mxu1 %v206_v14  ;;  %v197_v18 = vpop.f32.mrb[5].mxu1  ;;  %v196_v46 = vadd.f32 %v195_v17, %v87_v41  ;;  %v338_v14 = vld [vmem:[%s1563_s4] sm:$0x7] }
 0x11b   :  { %909 = vmatpush1.bf16.msra.mxu0 %v1303_v11  ;;  %1198 = vmatpush3.bf16.msra.mxu1 %v1307_v12  ;;  %v198_v21 = vadd.f32 %v197_v18, %v91_v13  ;;  %v199_v22 = vpop.f32.mrb[6].mxu1 }
 0x11c   :  { %910 = vmatprep.subr.bf16.mxu0 %v1310_v15  ;;  %1199 = vmatprep.subr.bf16.mxu1 %v1311_v16  ;;  %v200_v25 = vpop.f32.mrb[7].mxu1  ;;  %v204_v51 = vmax.f32 %v196_v46, 0.0  ;;  %v351_v15 = vrot.slane %v338_v14, %v1540_v36 }
 0x11d   :  { %v205_v26 = vmax.f32 %v198_v21, 0.0 }
 0x11e   :  { %v208_v55 = vpack.c.bf16 %v204_v51, %v204_v51 }
 0x11f   :  { %911 = vmatpush1.bf16.msra.mxu0 %v1308_v19  ;;  %1200 = vmatpush3.bf16.msra.mxu1 %v1312_v20  ;;  %v209_v29 = vpack.c.bf16 %v205_v26, %v205_v26  ;;  %v1032_v26 = vld [vmem:[%s1564_s5] sm:$0x7] }
 0x120   :  { %912 = vmatprep.subr.bf16.mxu0 %v1315_v23  ;;  %1201 = vmatprep.subr.bf16.mxu1 %v1316_v24  ;;  %v343_v23 = vrot.slane %v338_v14, %v1526_v60  ;;  %v347_v24 = vrot.slane %v338_v14, %v1533_v62 }
 0x121   :  { %1021 = vmatprep.mubr.bf16.mxu1 %v209_v29  ;;  %940 = vmatprep.mubr.bf16.mxu0 %v209_v29 }
 0x123   :  { %913 = vmatpush1.bf16.msra.mxu0 %v1313_v27  ;;  %1202 = vmatpush3.bf16.msra.mxu1 %v1317_v28  ;;  %v1037_v28 = vrot.slane %v1032_v26, %v1526_v60 }
 0x124   :  { %914 = vmatprep.subr.bf16.mxu0 %v1320_v30  ;;  %1203 = vmatprep.subr.bf16.mxu1 %v1321_v31  ;;  %v1041_v31 = vrot.slane %v1032_v26, %v1533_v62 }
 0x127   :  { %915 = vmatpush1.bf16.msra.mxu0 %v1318_v32  ;;  %1204 = vmatpush3.bf16.msra.mxu1 %v1322_v33 }
 0x128   :  { %916 = vmatprep.subr.bf16.mxu0 %v1325_v34  ;;  %1205 = vmatprep.subr.bf16.mxu1 %v1326_v35 }
 0x12b   :  { %917 = vmatpush1.bf16.msra.mxu0 %v1323_v37  ;;  %1206 = vmatpush3.bf16.msra.mxu1 %v1327_v38  ;;  %v1045_v38 = vrot.slane %v1032_v26, %v1540_v36 }
 0x12c   :  { %918 = vmatprep.subr.bf16.mxu0 %v1330_v39  ;;  %1207 = vmatprep.subr.bf16.mxu1 %v1331_v40 }
 0x12f   :  { %919 = vmatpush1.bf16.msra.mxu0 %v1328_v42  ;;  %1208 = vmatpush3.bf16.msra.mxu1 %v1332_v43 }
 0x130   :  { %920 = vmatprep.subr.bf16.mxu0 %v1335_v44  ;;  %1209 = vmatprep.subr.bf16.mxu1 %v1336_v45  ;;  %v1174_v44 = vld [vmem:[#allocation2] ss:$0 sm:$0xff] }
 0x133   :  { %921 = vmatpush1.bf16.msra.mxu0 %v1333_v47  ;;  %1210 = vmatpush3.bf16.msra.mxu1 %v1337_v48 }
 0x134   :  { %922 = vmatprep.subr.bf16.mxu0 %v1340_v49  ;;  %1211 = vmatprep.subr.bf16.mxu1 %v1341_v50 }
 0x137   :  { %923 = vmatpush1.bf16.msra.mxu0 %v1338_v52  ;;  %1212 = vmatpush3.bf16.msra.mxu1 %v1342_v53 }
 0x138   :  { %924 = vmatprep.subr.bf16.mxu0 %v1345_v54 }
 0x13a   :  { %1022 = vmatmul.mubr.bf16.vlgmr.msra.gmra.mrb[12].mxu1 %v208_v55 }
 0x13b   :  { %925 = vmatpush1.bf16.msra.mxu0 %v1343_v56 }
 0x13c   :  { %926 = vmatprep.subr.bf16.mxu0 %v1348_v57 }
 0x13f   :  { %927 = vmatpush1.bf16.msra.mxu0 %v1346_v58 }
 0x140   :  { %928 = vmatprep.subr.bf16.mxu0 %v1351_v59 }
 0x143   :  { %929 = vmatpush1.bf16.msra.mxu0 %v1349_v61 }
 0x144   :  { %930 = vmatprep.subr.bf16.mxu0 %v1354_v63 }
 0x147   :  { %931 = vmatpush1.bf16.msra.mxu0 %v1352_v0 }
 0x148   :  { %932 = vmatprep.subr.bf16.mxu0 %v1357_v1 }
 0x14b   :  { %933 = vmatpush1.bf16.msra.mxu0 %v1355_v2 }
 0x14c   :  { %934 = vmatprep.subr.bf16.mxu0 %v1360_v3 }
 0x14f   :  { %935 = vmatpush1.bf16.msra.mxu0 %v1358_v4 }
 0x150   :  { %936 = vmatprep.subr.bf16.mxu0 %v1363_v5 }
 0x153   :  { %937 = vmatpush1.bf16.msra.mxu0 %v1361_v6 }
 0x154   :  { %938 = vmatprep.subr.bf16.mxu0 %v1366_v7 }
 0x157   :  { %939 = vmatpush1.bf16.msra.mxu0 %v1364_v8 }
 0x15a   :  { %941 = vmatmul.mubr.bf16.vlgmr.msra.gmra.mrb[0].mxu0 %v208_v55 }
 0x1ed   :  { %v1191_v9 = vpop.f32.mrb[8].mxu1 }
 0x1ee   :  { %v1192_v10 = vpop.f32.mrb[9].mxu1 }
 0x1ef   :  { %v1193_v11 = vadd.f32 %v1192_v10, %v1191_v9  ;;  %v1194_v12 = vpop.f32.mrb[10].mxu1 }
 0x1f0   :  { %v1195_v13 = vpop.f32.mrb[11].mxu1 }
 0x1f1   :  { %v984_v18 = vadd.f32 %v1193_v11, %v351_v15 }
 0x20d   :  { %v1213_v16 = vpop.f32.mrb[12].mxu1 }
 0x20e   :  { %v1214_v17 = vpop.f32.mrb[13].mxu1 }
 0x20f   :  { %v1215_v19 = vadd.f32 %v1214_v17, %v1213_v16  ;;  %v1216_v20 = vpop.f32.mrb[14].mxu1 }
 0x210   :  { %v1217_v21 = vpop.f32.mrb[15].mxu1 }
 0x211   :  { %v1024_v22 = vadd.f32 %v1215_v19, %v984_v18 }
 0x213   :  { %v1031_v35 = vmax.f32 %v1024_v22, 0.0 }
 0x215   :  { %v1051_v41 = vmul.f32 %v1045_v38, %v1031_v35 }
 0x22d   :  { %v942_v25 = vpop.f32.mrb[0].mxu0 }
 0x22e   :  { %v1219_v27 = vadd.f32 %v942_v25, %v343_v23  ;;  %v944_v29 = vpop.f32.mrb[1].mxu0 }
 0x22f   :  { %v1220_v30 = vadd.f32 %v944_v29, %v347_v24  ;;  %v946_v32 = vpop.f32.mrb[2].mxu0 }
 0x230   :  { %v1029_v33 = vmax.f32 %v1219_v27, 0.0  ;;  %v947_v34 = vpop.f32.mrb[3].mxu0 }
 0x231   :  { %v1030_v37 = vmax.f32 %v1220_v30, 0.0 }
 0x232   :  { %v1049_v39 = vmul.f32 %v1037_v28, %v1029_v33 }
 0x233   :  { %v1050_v40 = vmul.f32 %v1041_v31, %v1030_v37 }
 0x235   :  { %v1052_v42 = vadd.f32 %v1050_v40, %v1049_v39 }
 0x237   :  { %v1053_v43 = vadd.f32 %v1052_v42, %v1051_v41 }
 0x239   :  { %1054 = vadd.xlane.f32.xlu0 %v1053_v43 }
 0x2c6   :  { %v1055_v45 = vpop.xlane.xlu0 %1054 }
 0x2c7   :  { %v1063_v60 = vadd.f32 %v1174_v44, %v1055_v45 }
 0x2c9   :  { %1065 = vst.msk [vmem:[%s1566_s7] sm:$0xff] %vm1064_vm1, %v1063_v60 }
 0x2ca   :  { %1070 = vsyncpa [#allocation4], 1 }
 0x2cb   :  { %1071 = vsyncpa [#allocation6], 1 }

</bundles_post_ra>
